<compile_context>
chip_gen: v5e
topology: v5e:2x2
jax: 0.10.0
libtpu: 0.0.40
codegen_flags: <defaults>
</compile_context>

<pallas_src>
import math

import jax
import jax.numpy as jnp
from jax.experimental import pallas as pl
from jax.experimental.pallas import tpu as pltpu

_HP = jax.lax.Precision.HIGHEST


def _coord_embed_kernel(x_ref, w_ref, b_ref, out_ref):
    # One MXU matmul (all folded rows / both coordinate branches via the
    # block-diagonal weight), one VPU broadcast bias add, one unmasked
    # lane-dense store.  Explicit HIGHEST precision: exact vs the fp32
    # reference and fully hidden behind the HBM-bound output store (tiny K).
    out_ref[...] = (
        jnp.dot(
            x_ref[...],
            w_ref[...],
            preferred_element_type=jnp.float32,
            precision=_HP,
        )
        + b_ref[...]
    ).astype(out_ref.dtype)


def fuse_coordinate_params(params):
    """One-time (init-time) fusion of the four Linear layers.

    Returns (w_fused, b_fused) where
      w_fused : (R*2C, R*emb)  R-fold block-diagonal collapsed weight
      b_fused : (1,   R*emb)   matching bias
    with R chosen so R*emb is a multiple of 128 (lane-dense stores).
    """
    w1, b1, w12, b12, w2, b2, w22, b22 = params
    C, H = w1.shape
    emb = 2 * H
    fold = 128 // math.gcd(emb, 128)          # smallest R with R*emb % 128 == 0

    # --- exact algebraic collapse of each Linear->Linear chain (fp32) ---
    w1_eff = jnp.dot(w1, w12, precision=_HP)
    b1_eff = jnp.dot(b1, w12, precision=_HP) + b12
    w2_eff = jnp.dot(w2, w22, precision=_HP)
    b2_eff = jnp.dot(b2, w22, precision=_HP) + b22

    # --- fuse both branches into one block-diagonal (2C, emb) weight ---
    w_small = jnp.zeros((2 * C, emb), jnp.float32)
    w_small = w_small.at[:C, :H].set(w1_eff).at[C:, H:].set(w2_eff)
    b_small = jnp.concatenate([b1_eff, b2_eff])

    # --- replicate R times on the diagonal for the row-fold ---
    w_fused = jnp.kron(jnp.eye(fold, dtype=jnp.float32), w_small)   # (R*2C, R*emb)
    b_fused = jnp.tile(b_small, fold).reshape(1, fold * emb)
    return w_fused, b_fused


def _choose_fold_tile(mf, kf, nf, budget_bytes=24 * 1024 * 1024, cap=4096):
    """Fold-rows per grid step, sized against double-buffered VMEM usage."""
    fixed = (kf * nf + nf) * 4              # resident weight + bias (fp32)
    per_row = 2 * (kf + nf) * 4             # double-buffered in + out tile bytes per fold-row
    tm = max(8, ((budget_bytes - fixed) // per_row) // 8 * 8)
    tm = min(tm, cap)                       # keep >=2 grid steps on big M so DMA out/in overlap
    return mf if tm >= mf else tm


def coordinate_embedding(x, w_fused, b_fused):
    """x: (B, S, 2, ...) float32 -> (B, S, emb_size) float32."""
    B, S, two = x.shape[0], x.shape[1], x.shape[2]
    assert two == 2
    x = x.reshape(B, S, 2, -1)              # mirrors the PyTorch reshape (free)
    C = x.shape[-1]

    kf, nf = w_fused.shape                  # (R*2C, R*emb)
    R = kf // (2 * C)
    emb = nf // R
    M = B * S

    # Contiguous (free) reshapes; no strided coordinate slices, no lane padding.
    x_flat = x.reshape(M, 2 * C)
    pad_rows = (-M) % R
    if pad_rows:
        # TODO(synk): rare fallback (extra HBM pass); in the real model pick
        # B*S to be a multiple of the fold factor so this path never triggers.
        x_flat = jnp.pad(x_flat, ((0, pad_rows), (0, 0)))
    mf = (M + pad_rows) // R
    x_fold = x_flat.reshape(mf, kf)

    tm = _choose_fold_tile(mf, kf, nf)
    grid_m = pl.cdiv(mf, tm)                # ragged last block handled by Pallas masking

    out = pl.pallas_call(
        _coord_embed_kernel,
        out_shape=jax.ShapeDtypeStruct((mf, nf), jnp.float32),
        grid=(grid_m,),
        in_specs=[
            pl.BlockSpec((tm, kf), lambda i: (i, 0)),   # streamed folded rows of x
            pl.BlockSpec((kf, nf), lambda i: (0, 0)),   # VMEM-resident fused weight
            pl.BlockSpec((1, nf), lambda i: (0, 0)),    # VMEM-resident fused bias
        ],
        out_specs=pl.BlockSpec((tm, nf), lambda i: (i, 0)),
        compiler_params=pltpu.CompilerParams(
            dimension_semantics=("parallel",),          # shard M across TCs on v7x
            vmem_limit_bytes=48 * 1024 * 1024,          # headroom, still < v7x 64 MiB
        ),
    )(x_fold, w_fused, b_fused)

    out = out.reshape(mf * R, emb)          # contiguous unfold (free)
    if pad_rows:
        out = out[:M]
    return out.reshape(B, S, emb)


def init_params(key, in_channels, emb_size):
    """Deterministic init matching nn.Linear parameter shapes.

    PyTorch Linear stores weight as (out, in); we keep the (in, out) transpose
    so the math computes x @ W directly.
    """
    half = emb_size // 2
    ks = jax.random.split(key, 8)
    scale1 = 1.0 / jnp.sqrt(in_channels)
    scale2 = 1.0 / jnp.sqrt(half)
    w1 = jax.random.uniform(ks[0], (in_channels, half), jnp.float32, -scale1, scale1)
    b1 = jax.random.uniform(ks[1], (half,), jnp.float32, -scale1, scale1)
    w12 = jax.random.uniform(ks[2], (half, half), jnp.float32, -scale2, scale2)
    b12 = jax.random.uniform(ks[3], (half,), jnp.float32, -scale2, scale2)
    w2 = jax.random.uniform(ks[4], (in_channels, half), jnp.float32, -scale1, scale1)
    b2 = jax.random.uniform(ks[5], (half,), jnp.float32, -scale1, scale1)
    w22 = jax.random.uniform(ks[6], (half, half), jnp.float32, -scale2, scale2)
    b22 = jax.random.uniform(ks[7], (half,), jnp.float32, -scale2, scale2)
    return (w1, b1, w12, b12, w2, b2, w22, b22)


def reference(x, params):
    """Faithful two-step chain, matching the PyTorch module order of operations."""
    w1, b1, w12, b12, w2, b2, w22, b22 = params
    p1 = x[:, :, 0, :]
    p2 = x[:, :, 1, :]
    p1 = jnp.dot(p1, w1, precision=_HP) + b1
    p2 = jnp.dot(p2, w2, precision=_HP) + b2
    p1 = jnp.dot(p1, w12, precision=_HP) + b12
    p2 = jnp.dot(p2, w22, precision=_HP) + b22
    return jnp.concatenate([p1, p2], axis=-1)


if __name__ == "__main__":
    key = jax.random.PRNGKey(0)
    kx, kp = jax.random.split(key)

    B, S, in_channels, emb_size = 2, 8, 4, 32
    x = jax.random.normal(kx, (B, S, 2, in_channels), jnp.float32)
    params = init_params(kp, in_channels, emb_size)

    # One-time, init-time fusion (hoisted out of the per-call path).
    w_fused, b_fused = fuse_coordinate_params(params)

    out = jax.jit(coordinate_embedding)(x, w_fused, b_fused)
    out = jax.block_until_ready(out)

    ref = reference(x, params)
    assert out.shape == (B, S, emb_size)
    # The exact algebraic collapse changes the fp32 accumulation order vs the
    # two-step reference, so compare with a modest (still tight) tolerance.
    assert jnp.allclose(out, ref, atol=1e-4, rtol=1e-4), "mismatch vs reference"

    print("KERNEL_OK")
</pallas_src>

<mosaic_0001>
module attributes {stable_mosaic.version = 11 : i64} {
  func.func @_coord_embed_kernel(%arg0: i32, %arg1: memref<4x32xf32, #tpu.memory_space<vmem>>, %arg2: memref<32x128xf32, #tpu.memory_space<vmem>>, %arg3: memref<1x128xf32, #tpu.memory_space<vmem>>, %arg4: memref<4x128xf32, #tpu.memory_space<vmem>>) attributes {dimension_semantics = [#tpu.dimension_semantics<parallel>], iteration_bounds = array<i64: 1>, scalar_prefetch = 0 : i64, scratch_operands = 0 : i64, tpu.core_type = #tpu.core_type<tc>, window_params = [{transform_indices = @transform_0, window_bounds = array<i64: 4, 32>}, {pipeline_mode = #tpu.pipeline_mode<synchronous>, transform_indices = @transform_1, window_bounds = array<i64: 32, 128>}, {pipeline_mode = #tpu.pipeline_mode<synchronous>, transform_indices = @transform_2, window_bounds = array<i64: 1, 128>}, {transform_indices = @transform_3, window_bounds = array<i64: 4, 128>}]} {
    %c0 = arith.constant 0 : index
    %c0_0 = arith.constant 0 : index
    %0 = vector.load %arg1[%c0, %c0_0] : memref<4x32xf32, #tpu.memory_space<vmem>>, vector<4x32xf32>
    %c0_1 = arith.constant 0 : index
    %c0_2 = arith.constant 0 : index
    %1 = vector.load %arg2[%c0_1, %c0_2] : memref<32x128xf32, #tpu.memory_space<vmem>>, vector<32x128xf32>
    %cst = arith.constant dense<0.000000e+00> : vector<4x128xf32>
    %2 = tpu.matmul %0, %1, %cst {dimension_numbers = #tpu.dot_dimension_numbers<[1], [0], [0], [1], [0, 0, 1, 1], [], []>, precision = #tpu.contract_precision<fp32>} : vector<4x32xf32>, vector<32x128xf32>, vector<4x128xf32> -> vector<4x128xf32>
    %c0_3 = arith.constant 0 : index
    %c0_4 = arith.constant 0 : index
    %3 = vector.load %arg3[%c0_3, %c0_4] : memref<1x128xf32, #tpu.memory_space<vmem>>, vector<1x128xf32>
    %4 = vector.broadcast %3 : vector<1x128xf32> to vector<4x128xf32>
    %5 = arith.addf %2, %4 : vector<4x128xf32>
    %c0_5 = arith.constant 0 : index
    %c0_6 = arith.constant 0 : index
    %6 = vector.load %arg4[%c0_5, %c0_6] : memref<4x128xf32, #tpu.memory_space<vmem>>, vector<4x128xf32>
    tpu.vector_store %arg4[%c0_5, %c0_6], %5 {strides = array<i32>} : memref<4x128xf32, #tpu.memory_space<vmem>>, vector<4x128xf32>,
    return
  }
  func.func @transform_0(%arg0: i32) -> (i32, i32) {
    %c0_i32 = arith.constant 0 : i32
    %c0_i32_0 = arith.constant 0 : i32
    return %arg0, %c0_i32 : i32, i32
  }
  func.func @transform_1(%arg0: i32) -> (i32, i32) {
    %c0_i32 = arith.constant 0 : i32
    %c0_i32_0 = arith.constant 0 : i32
    %c0_i32_1 = arith.constant 0 : i32
    return %c0_i32, %c0_i32_0 : i32, i32
  }
  func.func @transform_2(%arg0: i32) -> (i32, i32) {
    %c0_i32 = arith.constant 0 : i32
    %c0_i32_0 = arith.constant 0 : i32
    %c0_i32_1 = arith.constant 0 : i32
    return %c0_i32, %c0_i32_0 : i32, i32
  }
  func.func @transform_3(%arg0: i32) -> (i32, i32) {
    %c0_i32 = arith.constant 0 : i32
    %c0_i32_0 = arith.constant 0 : i32
    return %arg0, %c0_i32 : i32, i32
  }
}

</mosaic_0001>

<bundles_post_ra>
// kernel: coordinate_embedding.1
= control target key start
LH: loop header
LB: loop body
LE: loop exit
PB: predicated region body
PF: predicated region fallthrough
CT: control target
= control target key end

     0   :  { %vm23_vm0 = vcmask 261120   ;;  %s259_s1 = inlined_call_operand.vmem [shape: f32[32,128], index: 1, kind: input, shape index: {}]   ;;  %s260_s0 = inlined_call_operand.vmem [shape: f32[4,32], index: 0, kind: input, shape index: {}]   ;;  %s261_s2 = inlined_call_operand.vmem [shape: f32[1,128], index: 2, kind: input, shape index: {}]   ;;  %s262_s3 = inlined_call_operand.vmem [shape: f32[4,128], index: 3, kind: output, shape index: {}]  }
   0x1   :  { %v18_v0 = vld [vmem:[%s259_s1 + $0x18] sm:$0xff]  ;;  %v17_v1 = vld [vmem:[%s259_s1 + $0x10] sm:$0xff]  ;;  %v16_v2 = vld [vmem:[%s259_s1 + $0x8] sm:$0xff] }
   0x2   :  { %v39_v3 = vand.u32 4294901760, %v18_v0  ;;  %v41_v4 = vand.u32 4294901760, %v17_v1  ;;  %v43_v5 = vand.u32 4294901760, %v16_v2  ;;  %v15_v6 = vld [vmem:[%s259_s1] sm:$0xff] }
   0x3   :  { %v14_v7 = vld [vmem:[%s260_s0] sm:$0xf]  ;;  %v45_v8 = vand.u32 4294901760, %v15_v6 }
   0x4   :  { %v25_v9 = vsel %vm23_vm0, %v14_v7, 0  ;;  %v69_v10 = vsub.f32 %v18_v0, %v39_v3  ;;  %40 = vmatpush.msra.mxu0 %v39_v3  ;;  %v75_v11 = vsub.f32 %v17_v1, %v41_v4  ;;  %140 = vmatpush.msra.mxu3 %v39_v3  ;;  %v81_v12 = vsub.f32 %v16_v2, %v43_v5  ;;  %v217_v31 = vld [vmem:[%s261_s2] ss:$0 sm:$0xff] }
   0x5   :  { %v47_v13 = vand.u32 4294901760, %v25_v9  ;;  %v87_v14 = vsub.f32 %v15_v6, %v45_v8 }
   0x6   :  { %111 = vmatpush.msra.mxu2 %v69_v10  ;;  %42 = vmatpush.msra.mxu0 %v41_v4  ;;  %v70_v15 = vand.u32 4294901760, %v69_v10  ;;  %v76_v16 = vand.u32 4294901760, %v75_v11  ;;  %v82_v18 = vand.u32 4294901760, %v81_v12 }
   0x7   :  { %v48_v17 = vsub.f32 %v25_v9, %v47_v13  ;;  %142 = vmatpush.msra.mxu3 %v41_v4  ;;  %v88_v19 = vand.u32 4294901760, %v87_v14 }
   0x8   :  { %114 = vmatpush.msra.mxu2 %v75_v11  ;;  %v71_v20 = vsub.f32 %v69_v10, %v70_v15  ;;  %44 = vmatpush.msra.mxu0 %v43_v5  ;;  %v77_v21 = vsub.f32 %v75_v11, %v76_v16  ;;  %v83_v22 = vsub.f32 %v81_v12, %v82_v18 }
   0x9   :  { %v49_v23 = vand.u32 4294901760, %v48_v17  ;;  %144 = vmatpush.msra.mxu3 %v43_v5  ;;  %v89_v27 = vsub.f32 %v87_v14, %v88_v19 }
   0xa   :  { %v72_v24 = vand.u32 4294901760, %v71_v20  ;;  %117 = vmatpush.msra.mxu2 %v81_v12  ;;  %v78_v25 = vand.u32 4294901760, %v77_v21  ;;  %46 = vmatpush.msra.mxu0 %v45_v8  ;;  %v84_v28 = vand.u32 4294901760, %v83_v22 }
   0xb   :  { %v50_v26 = vsub.f32 %v48_v17, %v49_v23  ;;  %146 = vmatpush.msra.mxu3 %v45_v8  ;;  %v90_v30 = vand.u32 4294901760, %v89_v27 }
   0xc   :  { %169 = vmatpush.msrb.mxu0 %v70_v15  ;;  %73 = vmatpush.msra.mxu1 %v72_v24 }
   0xd   :  { %120 = vmatpush.msra.mxu2 %v87_v14  ;;  %v51_v29 = vand.u32 4294901760, %v50_v26  ;;  %150 = vmatmul.f32.vlgmr.msra.gmra.mxu3 %v49_v23 }
   0xe   :  { %123 = vmatmul.f32.vlgmr.msra.gmra.mxu2 %v48_v17  ;;  %79 = vmatpush.msra.mxu1 %v78_v25 }
   0xf   :  { %52 = vmatmul.f32.vlgmr.msra.gmra.mxu0 %v51_v29 }
  0x10   :  { %173 = vmatpush.msrb.mxu0 %v76_v16  ;;  %85 = vmatpush.msra.mxu1 %v84_v28 }
  0x12   :  { %177 = vmatpush.msrb.mxu0 %v82_v18  ;;  %91 = vmatpush.msra.mxu1 %v90_v30 }
  0x13   :  { %93 = vmatmul.f32.vlgmr.msra.gmra.mxu1 %v47_v13 }
  0x14   :  { %181 = vmatpush.msrb.mxu0 %v88_v19  ;;  %200 = vmatpush.msrb.mxu1 %v39_v3 }
  0x16   :  { %202 = vmatpush.msrb.mxu1 %v41_v4 }
  0x17   :  { %183 = vmatmul.f32.vlgmr.msrb.gmra.mxu0 %v47_v13 }
  0x18   :  { %204 = vmatpush.msrb.mxu1 %v43_v5 }
  0x1a   :  { %206 = vmatpush.msrb.mxu1 %v45_v8 }
  0x1b   :  { %208 = vmatmul.f32.vlgmr.msrb.gmra.mxu1 %v47_v13 }
  0x8c   :  { %v53_v32 = vpop.f32.mrf.mxu0 }
  0x8d   :  { %v54_v33 = vadd.f32 %v217_v31, %v53_v32 }
  0x90   :  { %v94_v34 = vpop.f32.mrf.mxu1  ;;  %v151_v37 = vpop.f32.mrf.mxu3 }
  0x91   :  { %v124_v35 = vpop.f32.mrf.mxu2  ;;  %v95_v36 = vadd.f32 %v94_v34, %v54_v33 }
  0x93   :  { %v125_v38 = vadd.f32 %v124_v35, %v95_v36 }
  0x94   :  { %v184_v39 = vpop.f32.mrf.mxu0 }
  0x95   :  { %v152_v40 = vadd.f32 %v151_v37, %v125_v38 }
  0x97   :  { %v185_v41 = vadd.f32 %v184_v39, %v152_v40 }
  0x98   :  { %v209_v42 = vpop.f32.mrf.mxu1 }
  0x99   :  { %v210_v43 = vadd.f32 %v209_v42, %v185_v41 }
  0x9b   :  { %212 = vst [vmem:[%s262_s3] sm:$0xf] %v210_v43 }

</bundles_post_ra>
